<compile_context>
chip_gen: v7x
topology: tpu7x:2x2x1
jax: 0.10.0
libtpu: 0.0.40
codegen_flags: <defaults>
</compile_context>

<pallas_src>
import functools
import math

import jax
import jax.numpy as jnp
from jax.experimental import pallas as pl
from jax.experimental.pallas import tpu as pltpu

_LANE = 128
_BASE_SUBLANES = 8            # f32 sublane granularity; narrower dtypes pack more rows/vreg
_MAX_LANE_WIDTH = 2048        # widest slab considered (16 vregs wide)
_MAX_BLOCK_BYTES = 4 << 20    # per-array per-block ceiling (diminishing returns past this)
_FALLBACK_VMEM = 16 << 20     # conservative VMEM assumption if get_tpu_info() is unavailable


def _logit_transform_kernel(x_ref, z_ref, logdet_ref, *, alpha):
    # Cast to f32 inside the kernel (input may be bf16/fp16/f32).
    x = x_ref[...].astype(jnp.float32)
    one_minus_alpha = jnp.float32(1.0 - alpha)
    half_alpha = jnp.float32(alpha / 2.0)
    if (1.0 - alpha) > 0.0:
        log_one_minus_alpha = jnp.float32(math.log(1.0 - alpha))
    else:
        log_one_minus_alpha = jnp.float32(float("-inf"))  # matches torch.log(0) = -inf

    x_new = half_alpha + one_minus_alpha * x
    lx = jnp.log(x_new)            # log(x_new)
    l1 = jnp.log(1.0 - x_new)      # log(1 - x_new)

    z_ref[...] = (lx - l1).astype(z_ref.dtype)
    # log((1-a)*(1/x_new + 1/(1-x_new))) == log(1-a) - log(x_new) - log(1-x_new)
    logdet_ref[...] = (log_one_minus_alpha - lx - l1).astype(logdet_ref.dtype)


def _vmem_capacity_bytes():
    """Physical VMEM bytes for the current chip, with a conservative fallback."""
    try:
        return int(pltpu.get_tpu_info().vmem_capacity_bytes)
    except Exception:
        return _FALLBACK_VMEM


def _choose_lane_width(n):
    """Widest lane-dense width (multiple of 128, <= 2048), preferring exact divisors of n."""
    if n <= _LANE:
        return _LANE
    top = min(_MAX_LANE_WIDTH, (n // _LANE) * _LANE)
    for cand in range(top, _LANE - 1, -_LANE):
        if n % cand == 0:
            return cand            # no padding needed at all
    return top                     # rare: pad up to a multiple of `top`


def logit_transform(x, alpha):
    """Applies LogitTransform elementwise to x (any shape). Returns (z, log_dz_by_dx)."""
    orig_shape = x.shape
    orig_dtype = x.dtype
    itemsize = jnp.dtype(orig_dtype).itemsize
    sub = _BASE_SUBLANES * max(1, 4 // itemsize)   # 8 (f32), 16 (bf16/f16), 32 (int8/fp8)

    xf = x.reshape(-1)
    n = xf.shape[0]

    # Lane-dense 2D slab (rows, W). W is chosen so that, whenever possible, n % W == 0
    # and no padding / output slicing is required (pure reshape, zero extra HBM traffic).
    w = _choose_lane_width(n)
    n_pad = pl.cdiv(n, w) * w
    padded = n_pad != n
    if padded:
        # Rare path. Pad with a value in (0, 1) so padded lanes' logs stay finite.
        xf = jnp.pad(xf, (0, n_pad - n), constant_values=0.25)

    rows = n_pad // w
    x2d = xf.reshape(rows, w)

    # Per-array block target: ~VMEM/20, capped at 4 MiB (v5e/v6e: 4 MiB; v7x: ~3 MiB).
    vmem_cap = _vmem_capacity_bytes()
    block_target = max(256 << 10, min(_MAX_BLOCK_BYTES, vmem_cap // 20))

    if rows <= sub:
        block_rows = rows          # block == full dim (satisfies the (8,128) rule)
    else:
        target_rows = max(sub, ((block_target // itemsize) // w) // sub * sub)
        block_rows = max(sub, min(target_rows, (rows // sub) * sub))
        # Keep >= 2 (ideally >= 4) grid steps so the "parallel" axis can shard across
        # both v7x TensorCores and the pipeline has something to overlap.
        if pl.cdiv(rows, block_rows) < 2 and rows >= 2 * sub:
            desired_steps = 4 if rows >= 4 * sub else 2
            split_rows = pl.cdiv(pl.cdiv(rows, desired_steps), sub) * sub
            block_rows = max(sub, min(block_rows, split_rows))

    grid = (pl.cdiv(rows, block_rows),)

    # Explicit scoped-VMEM budget: 3 arrays x 2 pipeline buffers + in-kernel f32
    # temporaries, with headroom; never above ~3/4 of physical VMEM.
    block_bytes = block_rows * w * itemsize
    vmem_limit = int(min(vmem_cap * 3 // 4,
                         max(16 << 20, 12 * block_bytes + (8 << 20))))

    kernel = functools.partial(_logit_transform_kernel, alpha=float(alpha))
    block_spec = pl.BlockSpec((block_rows, w), lambda i: (i, 0))

    z2d, logdet2d = pl.pallas_call(
        kernel,
        out_shape=(
            jax.ShapeDtypeStruct((rows, w), orig_dtype),
            jax.ShapeDtypeStruct((rows, w), orig_dtype),
        ),
        grid_spec=pltpu.PrefetchScalarGridSpec(
            num_scalar_prefetch=0,
            grid=grid,
            in_specs=[block_spec],
            out_specs=(block_spec, block_spec),
        ),
        compiler_params=pltpu.CompilerParams(
            dimension_semantics=("parallel",),
            vmem_limit_bytes=vmem_limit,
        ),
    )(x2d)

    if padded:
        z = z2d.reshape(-1)[:n].reshape(orig_shape)
        logdet = logdet2d.reshape(-1)[:n].reshape(orig_shape)
    else:
        z = z2d.reshape(orig_shape)
        logdet = logdet2d.reshape(orig_shape)
    return z, logdet


def _reference(x, alpha):
    x = x.astype(jnp.float32)
    x_new = alpha / 2.0 + (1.0 - alpha) * x
    z = jnp.log(x_new) - jnp.log(1.0 - x_new)
    dz_by_dx = (1.0 - alpha) * (1.0 / x_new + 1.0 / (1.0 - x_new))
    return z, jnp.log(dz_by_dx)


if __name__ == "__main__":
    alpha = 0.05  # typical dequantization alpha (static Python scalar)
    key = jax.random.PRNGKey(0)

    # NCHW input in (0, 1), as LogitTransform expects (e.g. normalized pixels).
    x = jax.random.uniform(key, (2, 4, 16, 16), dtype=jnp.float32,
                           minval=1e-3, maxval=1.0 - 1e-3)
    z, log_dz_by_dx = logit_transform(x, alpha)
    jax.block_until_ready((z, log_dz_by_dx))

    z_ref, logdet_ref = _reference(x, alpha)
    assert z.shape == x.shape and log_dz_by_dx.shape == x.shape
    assert z.dtype == x.dtype and log_dz_by_dx.dtype == x.dtype
    assert jnp.allclose(z, z_ref, atol=1e-5, rtol=1e-5)
    assert jnp.allclose(log_dz_by_dx, logdet_ref, atol=1e-5, rtol=1e-5)

    # Exercise the (rare) padding path: 3*5*7 = 105 elements, not a multiple of 128.
    x_odd = jax.random.uniform(jax.random.PRNGKey(1), (3, 5, 7), dtype=jnp.float32,
                               minval=1e-3, maxval=1.0 - 1e-3)
    z_o, ld_o = logit_transform(x_odd, alpha)
    jax.block_until_ready((z_o, ld_o))
    z_or, ld_or = _reference(x_odd, alpha)
    assert z_o.shape == x_odd.shape and ld_o.shape == x_odd.shape
    assert jnp.allclose(z_o, z_or, atol=1e-5, rtol=1e-5)
    assert jnp.allclose(ld_o, ld_or, atol=1e-5, rtol=1e-5)

    # bf16 input path (dtype-aware tiling; looser tolerance due to bf16 output rounding).
    x_bf16 = x.astype(jnp.bfloat16)
    z_b, ld_b = logit_transform(x_bf16, alpha)
    jax.block_until_ready((z_b, ld_b))
    z_br, ld_br = _reference(x_bf16, alpha)
    assert z_b.dtype == jnp.bfloat16 and ld_b.dtype == jnp.bfloat16
    assert jnp.allclose(z_b.astype(jnp.float32), z_br, atol=5e-2, rtol=5e-2)
    assert jnp.allclose(ld_b.astype(jnp.float32), ld_br, atol=5e-2, rtol=5e-2)

    print("KERNEL_OK")
</pallas_src>

<mosaic_0001>
module attributes {stable_mosaic.version = 11 : i64} {
  func.func @_logit_transform_kernel(%arg0: i32, %arg1: memref<1x2048xf32, #tpu.memory_space<vmem>>, %arg2: memref<1x2048xf32, #tpu.memory_space<vmem>>, %arg3: memref<1x2048xf32, #tpu.memory_space<vmem>>) attributes {dimension_semantics = [#tpu.dimension_semantics<parallel>], iteration_bounds = array<i64: 1>, scalar_prefetch = 0 : i64, scratch_operands = 0 : i64, tpu.core_type = #tpu.core_type<tc>, window_params = [{transform_indices = @transform_0, window_bounds = array<i64: 1, 2048>}, {transform_indices = @transform_1, window_bounds = array<i64: 1, 2048>}, {transform_indices = @transform_2, window_bounds = array<i64: 1, 2048>}]} {
    %c0 = arith.constant 0 : index
    %c0_0 = arith.constant 0 : index
    %0 = vector.load %arg1[%c0, %c0_0] : memref<1x2048xf32, #tpu.memory_space<vmem>>, vector<1x2048xf32>
    %cst = arith.constant 0.949999988 : f32
    %1 = vector.broadcast %cst : f32 to vector<1x2048xf32>
    %2 = arith.mulf %1, %0 : vector<1x2048xf32>
    %cst_1 = arith.constant 2.500000e-02 : f32
    %3 = vector.broadcast %cst_1 : f32 to vector<1x2048xf32>
    %4 = arith.addf %3, %2 : vector<1x2048xf32>
    %5 = math.log %4 : vector<1x2048xf32>
    %cst_2 = arith.constant 1.000000e+00 : f32
    %6 = vector.broadcast %cst_2 : f32 to vector<1x2048xf32>
    %7 = arith.subf %6, %4 : vector<1x2048xf32>
    %8 = math.log %7 : vector<1x2048xf32>
    %9 = arith.subf %5, %8 : vector<1x2048xf32>
    %c0_3 = arith.constant 0 : index
    %c0_4 = arith.constant 0 : index
    %10 = vector.load %arg2[%c0_3, %c0_4] : memref<1x2048xf32, #tpu.memory_space<vmem>>, vector<1x2048xf32>
    tpu.vector_store %arg2[%c0_3, %c0_4], %9 {strides = array<i32>} : memref<1x2048xf32, #tpu.memory_space<vmem>>, vector<1x2048xf32>,
    %cst_5 = arith.constant -0.0512932949 : f32
    %11 = vector.broadcast %cst_5 : f32 to vector<1x2048xf32>
    %12 = arith.subf %11, %5 : vector<1x2048xf32>
    %13 = arith.subf %12, %8 : vector<1x2048xf32>
    %c0_6 = arith.constant 0 : index
    %c0_7 = arith.constant 0 : index
    %14 = vector.load %arg3[%c0_6, %c0_7] : memref<1x2048xf32, #tpu.memory_space<vmem>>, vector<1x2048xf32>
    tpu.vector_store %arg3[%c0_6, %c0_7], %13 {strides = array<i32>} : memref<1x2048xf32, #tpu.memory_space<vmem>>, vector<1x2048xf32>,
    return
  }
  func.func @transform_0(%arg0: i32) -> (i32, i32) {
    %c0_i32 = arith.constant 0 : i32
    %c0_i32_0 = arith.constant 0 : i32
    return %arg0, %c0_i32 : i32, i32
  }
  func.func @transform_1(%arg0: i32) -> (i32, i32) {
    %c0_i32 = arith.constant 0 : i32
    %c0_i32_0 = arith.constant 0 : i32
    return %arg0, %c0_i32 : i32, i32
  }
  func.func @transform_2(%arg0: i32) -> (i32, i32) {
    %c0_i32 = arith.constant 0 : i32
    %c0_i32_0 = arith.constant 0 : i32
    return %arg0, %c0_i32 : i32, i32
  }
}

</mosaic_0001>

<bundles_post_ra>
// kernel: tpu_custom_call.1
= control target key start
LH: loop header
LB: loop body
LE: loop exit
PB: predicated region body
PF: predicated region fallthrough
CT: control target
= control target key end

     0   :  { %8 = vsyncpa [#allocation3], 0  ;;  %s216_s0 = inlined_call_operand.hbm [shape: f32[1,2048], index: 0, kind: input, shape index: {}]   ;;  %s217_s1 = inlined_call_operand.hbm [shape: f32[1,2048], index: 1, kind: output, shape index: {0}]   ;;  %s218_s2 = inlined_call_operand.hbm [shape: f32[1,2048], index: 2, kind: output, shape index: {1}]  }
   0x1   :  { %9 = vsyncpa [#allocation4], 0 }
   0x2   :  { %10 = vsyncpa [#allocation7], 0  ;;  %s162_s9 = smov [#allocation2]   ;;  %s90_s13 = scalar_lea.hbm %s216_s0, 256 }
   0x3   :  { %s17_s10 = sshll.u32 %s162_s9, 4  ;;  %p91_p0 = scmp.ne.s32.totalorder %s216_s0, %s90_s13  ;;  %s18_s10 = int_to_ptr.vmem [resolvable:$true] %s17_s10 }
   0x4   :  { %p94_p1 = scmp.lt.u32.totalorder %s90_s13, %s216_s0 }
   0x6   :  { %p96_p2 = pnand %p94_p1, %p91_p0 }
   0x8   :  { %99 = shalt.err (!%p96_p2)
}
   0x9   :  { %s100_s18 = scalar_lea.vmem %s18_s10, 256  ;;  %p105_p4 = scmp.lt.s32.totalorder %s18_s10, %s18_s10 }
   0xa   :  { %p101_p3 = scmp.ne.s32.totalorder %s18_s10, %s100_s18  ;;  %p106_p5 = scmp.lt.s32.totalorder %s100_s18, %s100_s18 }
   0xc   :  { %p107_p6 = por %p106_p5, %p105_p4 }
   0xe   :  { %p108_p7 = pnand %p107_p6, %p101_p3 }
  0x10   :  { %111 = shalt.err (!%p108_p7)
}
  0x11   :  { %20 = dma.hbm_to_vmem [thread:$0]  %s216_s0, 256, %s18_s10, [#allocation3]  }
  0x12   :  { %156 = dma.done.wait [#allocation3], 256  }
  0x13   :  { %157 = vsyncadd [#allocation3], 4294967040  ;;  %v24_v0 = vld [vmem:[#allocation2] sm:$0xff]  ;;  %v25_v1 = vld [vmem:[#allocation2 + $0x8] sm:$0xff]  ;;  %s163_s0 = smov [#allocation5]   ;;  %s164_s22 = smov [#allocation6]  }
  0x14   :  { %v26_v2 = vmul.f32 0.95, %v24_v0  ;;  %v27_v3 = vmul.f32 0.95, %v25_v1  ;;  %s56_s21 = sshll.u32 %s163_s0, 4  ;;  %s66_s23 = sshll.u32 %s164_s22, 4  ;;  %s57_s21 = int_to_ptr.vmem [resolvable:$true] %s56_s21  ;;  %s67_s23 = int_to_ptr.vmem [resolvable:$true] %s66_s23 }
  0x15   :  { %s112_s24 = scalar_lea.vmem %s57_s21, 256  ;;  %p117_p9 = scmp.lt.s32.totalorder %s57_s21, %s57_s21 }
  0x16   :  { %v28_v4 = vadd.f32 0.025, %v26_v2  ;;  %v29_v5 = vadd.f32 0.025, %v27_v3  ;;  %p113_p8 = scmp.ne.s32.totalorder %s57_s21, %s112_s24  ;;  %p118_p10 = scmp.lt.s32.totalorder %s112_s24, %s112_s24 }
  0x18   :  { %82 = vlog2.f32 %v28_v4  ;;  %v34_v6 = vsub.f32 1.0, %v28_v4  ;;  %v35_v7 = vsub.f32 1.0, %v29_v5  ;;  %p119_p11 = por %p118_p10, %p117_p9 }
  0x19   :  { %84 = vlog2.f32 %v29_v5 }
  0x1a   :  { %86 = vlog2.f32 %v34_v6  ;;  %p120_p12 = pnand %p119_p11, %p113_p8 }
  0x1b   :  { %88 = vlog2.f32 %v35_v7 }
  0x22   :  { %v83_v8 = vpop.eup %82 }
  0x23   :  { %v85_v9 = vpop.eup %84  ;;  %v31_v10 = vmul.f32 0.6931472, %v83_v8 }
  0x24   :  { %v87_v11 = vpop.eup %86  ;;  %v33_v12 = vmul.f32 0.6931472, %v85_v9 }
  0x25   :  { %v89_v13 = vpop.eup %88  ;;  %v37_v14 = vmul.f32 0.6931472, %v87_v11  ;;  %v44_v15 = vsub.f32 -0.051293295, %v31_v10 }
  0x26   :  { %v39_v16 = vmul.f32 0.6931472, %v89_v13  ;;  %v45_v17 = vsub.f32 -0.051293295, %v33_v12 }
  0x27   :  { %v40_v18 = vsub.f32 %v31_v10, %v37_v14  ;;  %v46_v19 = vsub.f32 %v44_v15, %v37_v14 }
  0x28   :  { %v41_v20 = vsub.f32 %v33_v12, %v39_v16  ;;  %v47_v21 = vsub.f32 %v45_v17, %v39_v16 }
  0x29   :  { %42 = vst [vmem:[#allocation5] sm:$0xff] %v40_v18  ;;  %48 = vst [vmem:[#allocation6] sm:$0xff] %v46_v19 }
  0x2a   :  { %43 = vst [vmem:[#allocation5 + $0x8] sm:$0xff] %v41_v20  ;;  %49 = vst [vmem:[#allocation6 + $0x8] sm:$0xff] %v47_v21 }
  0x2b   :  { %123 = shalt.err (!%p120_p12)
}
  0x2c   :  { %s124_s27 = scalar_lea.hbm %s217_s1, 256 }
  0x2d   :  { %p125_p13 = scmp.ne.s32.totalorder %s217_s1, %s124_s27  ;;  %p128_p0 = scmp.lt.u32.totalorder %s124_s27, %s217_s1 }
  0x2f   :  { %p130_p1 = pnand %p128_p0, %p125_p13 }
  0x31   :  { %133 = shalt.err (!%p130_p1)
}
  0x32   :  { %59 = dma.vmem_to_hbm [thread:$0]  %s57_s21, 256, %s217_s1, [#allocation4]  }
  0x33   :  { %s134_s6 = scalar_lea.vmem %s67_s23, 256  ;;  %p139_p3 = scmp.lt.s32.totalorder %s67_s23, %s67_s23 }
  0x34   :  { %p135_p2 = scmp.ne.s32.totalorder %s67_s23, %s134_s6  ;;  %p140_p4 = scmp.lt.s32.totalorder %s134_s6, %s134_s6 }
  0x36   :  { %p141_p5 = por %p140_p4, %p139_p3 }
  0x38   :  { %p142_p6 = pnand %p141_p5, %p135_p2 }
  0x3a   :  { %145 = shalt.err (!%p142_p6)
}
  0x3b   :  { %s146_s9 = scalar_lea.hbm %s218_s2, 256 }
  0x3c   :  { %p147_p7 = scmp.ne.s32.totalorder %s218_s2, %s146_s9  ;;  %p150_p8 = scmp.lt.u32.totalorder %s146_s9, %s218_s2 }
  0x3e   :  { %p152_p9 = pnand %p150_p8, %p147_p7 }
  0x40   :  { %155 = shalt.err (!%p152_p9)
}
  0x41   :  { %69 = dma.vmem_to_hbm [thread:$0]  %s67_s23, 256, %s218_s2, [#allocation7]  }
  0x42   :  { %158 = dma.done.wait [#allocation4], 256  }
  0x43   :  { %159 = vsyncadd [#allocation4], 4294967040 }
  0x44   :  { %160 = dma.done.wait [#allocation7], 256  }
  0x45   :  { %161 = vsyncadd [#allocation7], 4294967040 }
  0x46   :  { %76 = vsyncpa [#allocation3], 1 }
  0x47   :  { %77 = vsyncpa [#allocation4], 1 }
  0x48   :  { %78 = vsyncpa [#allocation7], 1 }

</bundles_post_ra>
